<compile_context>
chip_gen: v5e
topology: v5e:2x2
jax: 0.10.0
libtpu: 0.0.40
codegen_flags: <defaults>
</compile_context>

<pallas_src>
import math

import jax
import jax.numpy as jnp
from jax.experimental import pallas as pl
from jax.experimental.pallas import tpu as pltpu


def _round_up(x, m):
    return ((x + m - 1) // m) * m


# ------------------------------ fused kernel -----------------------------------
def _pp_layer_kernel(enc_ref, prm_ref, o_ref):
    """Fused PP_layer forward for a (bb, S, D) batch slice.

    enc_ref : (bb, S, D)      encoder output slice
    prm_ref : (S + 2D, W)     packed params:
                                rows [0, S)      : t0 = w0(f0)^T + w0_b + wv_b
                                rows [S, S+D)    : wv weight (D, D)
                                rows [S+D, S+2D) : we weight, cols [0, Np) live
    o_ref   : (bb, Np, D)     g_output (N padded to Np sublanes)
    """
    bb, S, D = enc_ref.shape
    Np = o_ref.shape[1]

    t0 = prm_ref[0:S, 0:D]                      # (S, D), batch independent
    wv_w = prm_ref[S:S + D, 0:D]                # (D, D)
    we_w = prm_ref[S + D:S + 2 * D, 0:Np]       # (D, Np)

    enc = enc_ref[...]                          # (bb, S, D) f32
    enc2 = enc.reshape(bb * S, D)               # batch folded into sublanes

    # t = tanh(t0 + wv(enc)) -- single MXU pass for all batch elements.
    a = jnp.tanh(
        jnp.dot(enc2, wv_w, preferred_element_type=jnp.float32).reshape(bb, S, D)
        + t0[None, :, :])                       # (bb, S, D)

    # logits = we(t); we_b omitted (per-character constant cancels in the
    # softmax over positions).
    logits = jnp.dot(a.reshape(bb * S, D), we_w,
                     preferred_element_type=jnp.float32).reshape(bb, S, Np)

    # Per-batch softmax over the position axis S (== PyTorch softmax(dim=2)
    # after transpose) and the final bmm with enc.  bb in {1, 2}: unrolled.
    for b in range(bb):
        lg = logits[b]                                           # (S, Np)
        m = jnp.max(lg, axis=0, keepdims=True)                   # (1, Np)
        e = jnp.exp(lg - m)                                      # (S, Np)
        p = e / jnp.sum(e, axis=0, keepdims=True)                # exact divide

        # g[n, d] = sum_s p[s, n] * enc[b, s, d]
        g = jax.lax.dot_general(
            p, enc[b], (((0,), (0,)), ((), ())),
            preferred_element_type=jnp.float32)                  # (Np, D)
        o_ref[b] = g.astype(o_ref.dtype)


# ------------------------------ wrapper ------------------------------------------
def pp_layer_pallas(enc, params, *, parallel_batch=None):
    """enc: (B, S, D) with S == n_position; returns g_output (B, N_max_character, D)."""
    B, S, D = enc.shape
    N = params["we_w"].shape[1]
    Np = _round_up(N, 8)                 # lane/sublane-friendly padded character count
    W = max(D, Np)                       # packed-slab lane width

    f32 = jnp.float32

    # Hoisted, param-only precompute (tiny; fused into the surrounding XLA graph):
    # t0[s, d] = sum_n w0_w[n, s] * f0[n, d] + w0_b[s] + wv_b[d]
    t0 = (params["w0_w"].astype(f32).T @ params["f0_emb"].astype(f32)
          + params["w0_b"].astype(f32)[:, None]
          + params["wv_b"].astype(f32)[None, :])                         # (S, D)

    def pad_to(x, rows, cols):
        x = x.astype(f32)
        return jnp.pad(x, ((0, rows - x.shape[0]), (0, cols - x.shape[1])))

    # One packed parameter slab -> a single input DMA descriptor.
    slab = jnp.concatenate([
        pad_to(t0, S, W),                      # rows [0, S)
        pad_to(params["wv_w"], D, W),          # rows [S, S+D)
        pad_to(params["we_w"], D, W),          # rows [S+D, S+2D), cols [0, Np) live
    ], axis=0)                                 # (S + 2D, W)
    # we_b is intentionally dropped: it cancels exactly in the softmax over S.

    if parallel_batch is None:
        # v7x has 2 TensorCores per chip -> shard the batch over cores there.
        kind = jax.devices()[0].device_kind.lower()
        parallel_batch = "v7" in kind
    n_steps = B if (parallel_batch and B > 1) else 1
    bb = B // n_steps

    out = pl.pallas_call(
        _pp_layer_kernel,
        grid=(n_steps,),
        in_specs=[
            pl.BlockSpec((bb, S, D), lambda i: (i, 0, 0)),   # enc (batch slice)
            pl.BlockSpec(slab.shape, lambda i: (0, 0)),      # packed params (broadcast)
        ],
        out_specs=pl.BlockSpec((bb, Np, D), lambda i: (i, 0, 0)),
        out_shape=jax.ShapeDtypeStruct((B, Np, D), jnp.float32),
        compiler_params=pltpu.CompilerParams(
            dimension_semantics=("parallel",) if n_steps > 1 else ("arbitrary",)),
    )(enc.astype(f32), slab)

    return out[:, :N, :]


# ------------------------------ pure-JAX reference ------------------------------
def pp_layer_reference(enc, p):
    """Literal transcription of PP_layer.forward (PyTorch) for verification."""
    B = enc.shape[0]
    N, D = p["f0_emb"].shape
    ro = jnp.broadcast_to(p["f0_emb"][None], (B, N, D))            # f0_embedding(arange)
    t = jnp.einsum("bnd,ns->bds", ro, p["w0_w"]) + p["w0_b"]       # w0(ro.transpose(1,2))
    t = jnp.transpose(t, (0, 2, 1))                                # (B, S, D)
    t = jnp.tanh(t + enc @ p["wv_w"] + p["wv_b"])
    t = t @ p["we_w"] + p["we_b"]                                  # (B, S, N)
    t = jax.nn.softmax(jnp.transpose(t, (0, 2, 1)), axis=2)        # (B, N, S)
    return jnp.einsum("bns,bsd->bnd", t, enc)                      # (B, N, D)


# ------------------------------ init helpers ------------------------------------
def _linear_init(key, fan_in, fan_out):
    kw, kb = jax.random.split(key)
    bound = 1.0 / math.sqrt(fan_in)
    w = jax.random.uniform(kw, (fan_in, fan_out), jnp.float32, -bound, bound)
    b = jax.random.uniform(kb, (fan_out,), jnp.float32, -bound, bound)
    return w, b


# ------------------------------ main ---------------------------------------------
if __name__ == "__main__":
    # Small shapes consistent with the module: n_dim=32, n_position=64,
    # N_max_character=25, batch=2.  enc_output: (B, n_position, n_dim).
    B, S, D, N = 2, 64, 32, 25

    key = jax.random.PRNGKey(0)
    k_f0, k_w0, k_wv, k_we, k_enc = jax.random.split(key, 5)

    w0_w, w0_b = _linear_init(k_w0, N, S)    # nn.Linear(N_max_character, n_position)
    wv_w, wv_b = _linear_init(k_wv, D, D)    # nn.Linear(n_dim, n_dim)
    we_w, we_b = _linear_init(k_we, D, N)    # nn.Linear(n_dim, N_max_character)

    params = dict(
        f0_emb=jax.random.normal(k_f0, (N, D), jnp.float32),   # nn.Embedding weight
        w0_w=w0_w, w0_b=w0_b,
        wv_w=wv_w, wv_b=wv_b,
        we_w=we_w, we_b=we_b,
    )
    enc = jax.random.normal(k_enc, (B, S, D), jnp.float32)

    fwd = jax.jit(pp_layer_pallas)
    out = fwd(enc, params)
    jax.block_until_ready(out)

    with jax.default_matmul_precision("highest"):
        ref = pp_layer_reference(enc, params)

    assert out.shape == (B, N, D)
    assert bool(jnp.all(jnp.isfinite(out)))
    max_err = float(jnp.max(jnp.abs(out - ref)))
    assert max_err < 1e-2, f"max abs error vs reference: {max_err}"

    print("KERNEL_OK")
</pallas_src>

<mosaic_0001>
module attributes {stable_mosaic.version = 11 : i64} {
  func.func @_pp_layer_kernel(%arg0: i32, %arg1: memref<2x64x32xf32, #tpu.memory_space<vmem>>, %arg2: memref<128x32xf32, #tpu.memory_space<vmem>>, %arg3: memref<2x32x32xf32, #tpu.memory_space<vmem>>) attributes {dimension_semantics = [#tpu.dimension_semantics<arbitrary>], iteration_bounds = array<i64: 1>, scalar_prefetch = 0 : i64, scratch_operands = 0 : i64, tpu.core_type = #tpu.core_type<tc>, window_params = [{transform_indices = @transform_0, window_bounds = array<i64: 2, 64, 32>}, {pipeline_mode = #tpu.pipeline_mode<synchronous>, transform_indices = @transform_1, window_bounds = array<i64: 128, 32>}, {transform_indices = @transform_2, window_bounds = array<i64: 2, 32, 32>}]} {
    %c0 = arith.constant 0 : index
    %c0_0 = arith.constant 0 : index
    %0 = vector.load %arg2[%c0, %c0_0] : memref<128x32xf32, #tpu.memory_space<vmem>>, vector<64x32xf32>
    %c64 = arith.constant 64 : index
    %c0_1 = arith.constant 0 : index
    %1 = vector.load %arg2[%c64, %c0_1] : memref<128x32xf32, #tpu.memory_space<vmem>>, vector<32x32xf32>
    %c96 = arith.constant 96 : index
    %c0_2 = arith.constant 0 : index
    %2 = vector.load %arg2[%c96, %c0_2] : memref<128x32xf32, #tpu.memory_space<vmem>>, vector<32x32xf32>
    %c0_3 = arith.constant 0 : index
    %c0_4 = arith.constant 0 : index
    %c0_5 = arith.constant 0 : index
    %3 = vector.load %arg1[%c0_3, %c0_4, %c0_5] : memref<2x64x32xf32, #tpu.memory_space<vmem>>, vector<2x64x32xf32>
    %4 = vector.shape_cast %3 : vector<2x64x32xf32> to vector<128x32xf32>
    %cst = arith.constant dense<0.000000e+00> : vector<128x32xf32>
    %5 = tpu.matmul %4, %1, %cst {dimension_numbers = #tpu.dot_dimension_numbers<[1], [0], [0], [1], [0, 0, 1, 1], [], []>} : vector<128x32xf32>, vector<32x32xf32>, vector<128x32xf32> -> vector<128x32xf32>
    %6 = vector.shape_cast %5 : vector<128x32xf32> to vector<2x64x32xf32>
    %7 = vector.shape_cast %0 : vector<64x32xf32> to vector<1x64x32xf32>
    %8 = vector.broadcast %7 : vector<1x64x32xf32> to vector<2x64x32xf32>
    %9 = arith.addf %6, %8 : vector<2x64x32xf32>
    %10 = math.tanh %9 : vector<2x64x32xf32>
    %11 = vector.shape_cast %10 : vector<2x64x32xf32> to vector<128x32xf32>
    %cst_6 = arith.constant dense<0.000000e+00> : vector<128x32xf32>
    %12 = tpu.matmul %11, %2, %cst_6 {dimension_numbers = #tpu.dot_dimension_numbers<[1], [0], [0], [1], [0, 0, 1, 1], [], []>} : vector<128x32xf32>, vector<32x32xf32>, vector<128x32xf32> -> vector<128x32xf32>
    %13 = vector.shape_cast %12 : vector<128x32xf32> to vector<2x64x32xf32>
    %14 = vector.extract_strided_slice %13 {offsets = [0, 0, 0], sizes = [1, 64, 32], strides = [1, 1, 1]} : vector<2x64x32xf32> to vector<1x64x32xf32>
    %15 = vector.shape_cast %14 : vector<1x64x32xf32> to vector<64x32xf32>
    %cst_7 = arith.constant dense<0xFF800000> : vector<32xf32>
    %16 = vector.multi_reduction <maximumf>, %15, %cst_7 [0] : vector<64x32xf32> to vector<32xf32>
    %17 = vector.shape_cast %16 : vector<32xf32> to vector<1x32xf32>
    %18 = vector.broadcast %17 : vector<1x32xf32> to vector<64x32xf32>
    %19 = arith.subf %15, %18 : vector<64x32xf32>
    %20 = math.exp %19 : vector<64x32xf32>
    %cst_8 = arith.constant dense<0.000000e+00> : vector<32xf32>
    %21 = vector.multi_reduction <add>, %20, %cst_8 [0] : vector<64x32xf32> to vector<32xf32>
    %22 = vector.shape_cast %21 : vector<32xf32> to vector<1x32xf32>
    %23 = vector.broadcast %22 : vector<1x32xf32> to vector<64x32xf32>
    %24 = arith.divf %20, %23 : vector<64x32xf32>
    %25 = vector.extract_strided_slice %3 {offsets = [0, 0, 0], sizes = [1, 64, 32], strides = [1, 1, 1]} : vector<2x64x32xf32> to vector<1x64x32xf32>
    %26 = vector.shape_cast %25 : vector<1x64x32xf32> to vector<64x32xf32>
    %cst_9 = arith.constant dense<0.000000e+00> : vector<32x32xf32>
    %27 = tpu.matmul %24, %26, %cst_9 {dimension_numbers = #tpu.dot_dimension_numbers<[0], [0], [1], [1], [0, 1, 1, 1], [], []>} : vector<64x32xf32>, vector<64x32xf32>, vector<32x32xf32> -> vector<32x32xf32>
    %c0_10 = arith.constant 0 : index
    %c0_11 = arith.constant 0 : index
    %c0_12 = arith.constant 0 : index
    %28 = vector.load %arg3[%c0_10, %c0_11, %c0_12] : memref<2x32x32xf32, #tpu.memory_space<vmem>>, vector<1x32x32xf32>
    %29 = vector.shape_cast %28 : vector<1x32x32xf32> to vector<32x32xf32>
    %30 = vector.shape_cast %27 : vector<32x32xf32> to vector<1x32x32xf32>
    tpu.vector_store %arg3[%c0_10, %c0_11, %c0_12], %30 {strides = array<i32>} : memref<2x32x32xf32, #tpu.memory_space<vmem>>, vector<1x32x32xf32>,
    %31 = vector.extract_strided_slice %13 {offsets = [1, 0, 0], sizes = [1, 64, 32], strides = [1, 1, 1]} : vector<2x64x32xf32> to vector<1x64x32xf32>
    %32 = vector.shape_cast %31 : vector<1x64x32xf32> to vector<64x32xf32>
    %cst_13 = arith.constant dense<0xFF800000> : vector<32xf32>
    %33 = vector.multi_reduction <maximumf>, %32, %cst_13 [0] : vector<64x32xf32> to vector<32xf32>
    %34 = vector.shape_cast %33 : vector<32xf32> to vector<1x32xf32>
    %35 = vector.broadcast %34 : vector<1x32xf32> to vector<64x32xf32>
    %36 = arith.subf %32, %35 : vector<64x32xf32>
    %37 = math.exp %36 : vector<64x32xf32>
    %cst_14 = arith.constant dense<0.000000e+00> : vector<32xf32>
    %38 = vector.multi_reduction <add>, %37, %cst_14 [0] : vector<64x32xf32> to vector<32xf32>
    %39 = vector.shape_cast %38 : vector<32xf32> to vector<1x32xf32>
    %40 = vector.broadcast %39 : vector<1x32xf32> to vector<64x32xf32>
    %41 = arith.divf %37, %40 : vector<64x32xf32>
    %42 = vector.extract_strided_slice %3 {offsets = [1, 0, 0], sizes = [1, 64, 32], strides = [1, 1, 1]} : vector<2x64x32xf32> to vector<1x64x32xf32>
    %43 = vector.shape_cast %42 : vector<1x64x32xf32> to vector<64x32xf32>
    %cst_15 = arith.constant dense<0.000000e+00> : vector<32x32xf32>
    %44 = tpu.matmul %41, %43, %cst_15 {dimension_numbers = #tpu.dot_dimension_numbers<[0], [0], [1], [1], [0, 1, 1, 1], [], []>} : vector<64x32xf32>, vector<64x32xf32>, vector<32x32xf32> -> vector<32x32xf32>
    %c1 = arith.constant 1 : index
    %c0_16 = arith.constant 0 : index
    %c0_17 = arith.constant 0 : index
    %45 = vector.load %arg3[%c1, %c0_16, %c0_17] : memref<2x32x32xf32, #tpu.memory_space<vmem>>, vector<1x32x32xf32>
    %46 = vector.shape_cast %45 : vector<1x32x32xf32> to vector<32x32xf32>
    %47 = vector.shape_cast %44 : vector<32x32xf32> to vector<1x32x32xf32>
    tpu.vector_store %arg3[%c1, %c0_16, %c0_17], %47 {strides = array<i32>} : memref<2x32x32xf32, #tpu.memory_space<vmem>>, vector<1x32x32xf32>,
    return
  }
  func.func @transform_0(%arg0: i32) -> (i32, i32, i32) {
    %c0_i32 = arith.constant 0 : i32
    %c0_i32_0 = arith.constant 0 : i32
    %c0_i32_1 = arith.constant 0 : i32
    return %arg0, %c0_i32, %c0_i32_0 : i32, i32, i32
  }
  func.func @transform_1(%arg0: i32) -> (i32, i32) {
    %c0_i32 = arith.constant 0 : i32
    %c0_i32_0 = arith.constant 0 : i32
    %c0_i32_1 = arith.constant 0 : i32
    return %c0_i32, %c0_i32_0 : i32, i32
  }
  func.func @transform_2(%arg0: i32) -> (i32, i32, i32) {
    %c0_i32 = arith.constant 0 : i32
    %c0_i32_0 = arith.constant 0 : i32
    %c0_i32_1 = arith.constant 0 : i32
    return %arg0, %c0_i32, %c0_i32_0 : i32, i32, i32
  }
}

</mosaic_0001>

<bundles_post_ra>
// kernel: pp_layer_pallas.1
= control target key start
LH: loop header
LB: loop body
LE: loop exit
PB: predicated region body
PF: predicated region fallthrough
CT: control target
= control target key end

     0   :  { %vm43_vm0 = vcmask 261120   ;;  %vm422_vm9 = vcmask 523264   ;;  %s1012_s1 = inlined_call_operand.vmem [shape: f32[128,32], index: 1, kind: input, shape index: {}]   ;;  %s1013_s0 = inlined_call_operand.vmem [shape: f32[2,64,32], index: 0, kind: input, shape index: {}]   ;;  %s1014_s2 = inlined_call_operand.vmem [shape: f32[2,32,32], index: 2, kind: output, shape index: {}]  }
   0x1   :  { %v22_v0 = vld [vmem:[%s1012_s1 + $0x58] sm:$0xff]  ;;  %v21_v1 = vld [vmem:[%s1012_s1 + $0x50] sm:$0xff]  ;;  %v20_v2 = vld [vmem:[%s1012_s1 + $0x48] sm:$0xff] }
   0x2   :  { %104 = vmatpush.msra.mxu0 %v22_v0  ;;  %682 = vmatpush.msra.mxu2 %v22_v0  ;;  %v19_v3 = vld [vmem:[%s1012_s1 + $0x40] sm:$0xff]  ;;  %v28_v5 = vld [vmem:[%s1013_s0 + $0x8] sm:$0xff]  ;;  %v29_v6 = vld [vmem:[%s1013_s0 + $0x10] sm:$0xff] }
   0x3   :  { %v27_v4 = vld [vmem:[%s1013_s0] sm:$0xff]  ;;  %v34_v7 = vld [vmem:[%s1013_s0 + $0x38] sm:$0xff]  ;;  %v33_v8 = vld [vmem:[%s1013_s0 + $0x30] sm:$0xff] }
   0x4   :  { %105 = vmatpush.msra.mxu0 %v21_v1  ;;  %683 = vmatpush.msra.mxu2 %v21_v1  ;;  %v32_v9 = vld [vmem:[%s1013_s0 + $0x28] sm:$0xff]  ;;  %v30_v10 = vld [vmem:[%s1013_s0 + $0x18] sm:$0xff]  ;;  %v31_v11 = vld [vmem:[%s1013_s0 + $0x20] sm:$0xff] }
   0x5   :  { %v38_v12 = vld [vmem:[%s1013_s0 + $0x58] sm:$0xff]  ;;  %v39_v13 = vld [vmem:[%s1013_s0 + $0x60] sm:$0xff]  ;;  %v40_v15 = vld [vmem:[%s1013_s0 + $0x68] sm:$0xff] }
   0x6   :  { %106 = vmatpush.msra.mxu0 %v20_v2  ;;  %684 = vmatpush.msra.mxu2 %v20_v2  ;;  %v35_v14 = vld [vmem:[%s1013_s0 + $0x40] sm:$0xff]  ;;  %v36_v16 = vld [vmem:[%s1013_s0 + $0x48] sm:$0xff]  ;;  %v41_v17 = vld [vmem:[%s1013_s0 + $0x70] sm:$0xff] }
   0x7   :  { %v37_v18 = vld [vmem:[%s1013_s0 + $0x50] sm:$0xff]  ;;  %v42_v19 = vld [vmem:[%s1013_s0 + $0x78] sm:$0xff]  ;;  %v24_v22 = vld [vmem:[%s1012_s1 + $0x68] sm:$0xff] }
   0x8   :  { %107 = vmatpush.msra.mxu0 %v19_v3  ;;  %685 = vmatpush.msra.mxu2 %v19_v3  ;;  %v26_v20 = vld [vmem:[%s1012_s1 + $0x78] sm:$0xff]  ;;  %v25_v21 = vld [vmem:[%s1012_s1 + $0x70] sm:$0xff]  ;;  %v23_v23 = vld [vmem:[%s1012_s1 + $0x60] sm:$0xff] }
   0x9   :  { %638 = vmatmul.msk.f32.vlgmr.msra.gmra.mxu0 %vm43_vm0, %v27_v4  ;;  %649 = vmatmul.msk.f32.vlgmr.msra.gmra.mxu2 %vm43_vm0, %v38_v12  ;;  %v11_v24 = vld [vmem:[%s1012_s1] sm:$0xff]  ;;  %v12_v27 = vld [vmem:[%s1012_s1 + $0x8] sm:$0xff]  ;;  %v13_v31 = vld [vmem:[%s1012_s1 + $0x10] sm:$0xff] }
   0xa   :  { %443 = vmatpush.msrb.mxu2 %v34_v7  ;;  %249 = vmatpush.msra.mxu1 %v26_v20  ;;  %v14_v35 = vld [vmem:[%s1012_s1 + $0x18] sm:$0xff]  ;;  %v15_v39 = vld [vmem:[%s1012_s1 + $0x20] sm:$0xff]  ;;  %v16_v43 = vld [vmem:[%s1012_s1 + $0x28] sm:$0xff] }
   0xb   :  { %686 = vmatpush.msra.mxu3 %v26_v20  ;;  %v17_v47 = vld [vmem:[%s1012_s1 + $0x30] sm:$0xff]  ;;  %v18_v51 = vld [vmem:[%s1012_s1 + $0x38] sm:$0xff] }
   0xc   :  { %444 = vmatpush.msrb.mxu2 %v33_v8  ;;  %250 = vmatpush.msra.mxu1 %v25_v21 }
   0xd   :  { %687 = vmatpush.msra.mxu3 %v25_v21 }
   0xe   :  { %445 = vmatpush.msrb.mxu2 %v32_v9  ;;  %251 = vmatpush.msra.mxu1 %v24_v22 }
   0xf   :  { %688 = vmatpush.msra.mxu3 %v24_v22 }
  0x10   :  { %446 = vmatpush.msrb.mxu2 %v31_v11  ;;  %252 = vmatpush.msra.mxu1 %v23_v23 }
  0x11   :  { %639 = vmatmul.msk.f32.gmra.mxu0 %vm43_vm0, %v28_v5  ;;  %650 = vmatmul.msk.f32.gmra.mxu2 %vm43_vm0, %v39_v13 }
  0x12   :  { %447 = vmatpush.msrb.mxu2 %v30_v10  ;;  %689 = vmatpush.msra.mxu3 %v23_v23 }
  0x14   :  { %448 = vmatpush.msrb.mxu2 %v29_v6  ;;  %608 = vmatpush.msrb.mxu3 %v42_v19 }
  0x16   :  { %449 = vmatpush.msrb.mxu2 %v28_v5  ;;  %609 = vmatpush.msrb.mxu3 %v41_v17 }
  0x18   :  { %450 = vmatpush.msrb.mxu2 %v27_v4  ;;  %610 = vmatpush.msrb.mxu3 %v40_v15 }
  0x19   :  { %640 = vmatmul.msk.f32.gmra.mxu0 %vm43_vm0, %v29_v6  ;;  %651 = vmatmul.msk.f32.gmra.mxu2 %vm43_vm0, %v40_v15 }
  0x1a   :  { %611 = vmatpush.msrb.mxu3 %v39_v13 }
  0x1c   :  { %612 = vmatpush.msrb.mxu3 %v38_v12 }
  0x1e   :  { %613 = vmatpush.msrb.mxu3 %v37_v18 }
  0x20   :  { %614 = vmatpush.msrb.mxu3 %v36_v16 }
  0x21   :  { %641 = vmatmul.msk.f32.gmra.mxu0 %vm43_vm0, %v30_v10  ;;  %652 = vmatmul.msk.f32.gmra.mxu2 %vm43_vm0, %v41_v17 }
  0x22   :  { %615 = vmatpush.msrb.mxu3 %v35_v14 }
  0x29   :  { %642 = vmatmul.msk.f32.gmra.mxu0 %vm43_vm0, %v31_v11  ;;  %653 = vmatmul.msk.f32.gmra.mxu2 %vm43_vm0, %v42_v19 }
  0x31   :  { %643 = vmatmul.msk.f32.gmra.mxu0 %vm43_vm0, %v32_v9 }
  0x39   :  { %644 = vmatmul.msk.f32.gmra.mxu0 %vm43_vm0, %v33_v8 }
  0x41   :  { %645 = vmatmul.msk.f32.gmra.mxu0 %vm43_vm0, %v34_v7 }
  0x49   :  { %646 = vmatmul.msk.f32.gmra.mxu0 %vm43_vm0, %v35_v14 }
  0x51   :  { %647 = vmatmul.msk.f32.gmra.mxu0 %vm43_vm0, %v36_v16 }
  0x59   :  { %648 = vmatmul.msk.f32.gmra.mxu0 %vm43_vm0, %v37_v18 }
  0x86   :  { %v109_v25 = vpop.f32.mrf.mxu0 }
  0x87   :  { %v157_v26 = vadd.f32 %v109_v25, %v11_v24 }
  0x89   :  { %691 = vtanh.f32 %v157_v26 }
  0x8c   :  { %v142_v61 = vpop.f32.mrf.mxu2 }
  0x8d   :  { %v168_v2 = vadd.f32 %v142_v61, %v14_v35 }
  0x8e   :  { %v112_v28 = vpop.f32.mrf.mxu0 }
  0x8f   :  { %v692_v29 = vpop.eup %691  ;;  %v158_v30 = vadd.f32 %v112_v28, %v12_v27 }
  0x90   :  { %654 = vmatmul.msk.f32.vlgmr.msra.gmra.mxu1 %vm43_vm0, %v692_v29 }
  0x91   :  { %693 = vtanh.f32 %v158_v30 }
  0x94   :  { %v145_v1 = vpop.f32.mrf.mxu2 }
  0x95   :  { %v169_v4 = vadd.f32 %v145_v1, %v15_v39 }
  0x96   :  { %v115_v32 = vpop.f32.mrf.mxu0 }
  0x97   :  { %v694_v33 = vpop.eup %693  ;;  %v159_v34 = vadd.f32 %v115_v32, %v13_v31 }
  0x98   :  { %655 = vmatmul.msk.f32.gmra.mxu1 %vm43_vm0, %v694_v33 }
  0x99   :  { %695 = vtanh.f32 %v159_v34 }
  0x9c   :  { %v148_v5 = vpop.f32.mrf.mxu2 }
  0x9d   :  { %v170_v7 = vadd.f32 %v148_v5, %v16_v43 }
  0x9e   :  { %v118_v36 = vpop.f32.mrf.mxu0 }
  0x9f   :  { %v696_v37 = vpop.eup %695  ;;  %v160_v38 = vadd.f32 %v118_v36, %v14_v35 }
  0xa0   :  { %656 = vmatmul.msk.f32.gmra.mxu1 %vm43_vm0, %v696_v37 }
  0xa1   :  { %697 = vtanh.f32 %v160_v38 }
  0xa4   :  { %v151_v9 = vpop.f32.mrf.mxu2 }
  0xa5   :  { %v171_v10 = vadd.f32 %v151_v9, %v17_v47 }
  0xa6   :  { %v121_v40 = vpop.f32.mrf.mxu0 }
  0xa7   :  { %v698_v41 = vpop.eup %697  ;;  %v161_v42 = vadd.f32 %v121_v40, %v15_v39 }
  0xa8   :  { %657 = vmatmul.msk.f32.gmra.mxu1 %vm43_vm0, %v698_v41 }
  0xa9   :  { %699 = vtanh.f32 %v161_v42 }
  0xac   :  { %v154_v12 = vpop.f32.mrf.mxu2 }
  0xad   :  { %v172_v13 = vadd.f32 %v154_v12, %v18_v51 }
  0xae   :  { %v124_v44 = vpop.f32.mrf.mxu0 }
  0xaf   :  { %v700_v45 = vpop.eup %699  ;;  %v162_v46 = vadd.f32 %v124_v44, %v16_v43 }
  0xb0   :  { %658 = vmatmul.msk.f32.gmra.mxu1 %vm43_vm0, %v700_v45 }
  0xb1   :  { %701 = vtanh.f32 %v162_v46 }
  0xb6   :  { %v127_v48 = vpop.f32.mrf.mxu0 }
  0xb7   :  { %v702_v49 = vpop.eup %701  ;;  %v163_v50 = vadd.f32 %v127_v48, %v17_v47 }
  0xb8   :  { %659 = vmatmul.msk.f32.gmra.mxu1 %vm43_vm0, %v702_v49 }
  0xb9   :  { %703 = vtanh.f32 %v163_v50 }
  0xbe   :  { %v130_v52 = vpop.f32.mrf.mxu0 }
  0xbf   :  { %v704_v53 = vpop.eup %703  ;;  %v164_v54 = vadd.f32 %v130_v52, %v18_v51 }
  0xc0   :  { %660 = vmatmul.msk.f32.gmra.mxu1 %vm43_vm0, %v704_v53 }
  0xc1   :  { %705 = vtanh.f32 %v164_v54 }
  0xc6   :  { %v133_v55 = vpop.f32.mrf.mxu0 }
  0xc7   :  { %v706_v56 = vpop.eup %705  ;;  %v165_v57 = vadd.f32 %v133_v55, %v11_v24 }
  0xc8   :  { %661 = vmatmul.msk.f32.gmra.mxu1 %vm43_vm0, %v706_v56 }
  0xc9   :  { %707 = vtanh.f32 %v165_v57 }
  0xce   :  { %v136_v58 = vpop.f32.mrf.mxu0 }
  0xcf   :  { %v708_v59 = vpop.eup %707  ;;  %v166_v60 = vadd.f32 %v136_v58, %v12_v27 }
  0xd0   :  { %662 = vmatmul.msk.f32.gmra.mxu1 %vm43_vm0, %v708_v59 }
  0xd1   :  { %709 = vtanh.f32 %v166_v60 }
  0xd6   :  { %v139_v62 = vpop.f32.mrf.mxu0 }
  0xd7   :  { %v710_v63 = vpop.eup %709  ;;  %v167_v0 = vadd.f32 %v139_v62, %v13_v31 }
  0xd8   :  { %663 = vmatmul.msk.f32.gmra.mxu1 %vm43_vm0, %v710_v63 }
  0xd9   :  { %711 = vtanh.f32 %v167_v0 }
  0xda   :  { %713 = vtanh.f32 %v168_v2 }
  0xdb   :  { %715 = vtanh.f32 %v169_v4 }
  0xdc   :  { %717 = vtanh.f32 %v170_v7 }
  0xdd   :  { %719 = vtanh.f32 %v171_v10 }
  0xde   :  { %721 = vtanh.f32 %v172_v13 }
  0xdf   :  { %v712_v3 = vpop.eup %711 }
  0xe0   :  { %664 = vmatmul.msk.f32.vlgmr.msra.gmra.mxu3 %vm43_vm0, %v712_v3  ;;  %v714_v6 = vpop.eup %713 }
  0xe1   :  { %v716_v8 = vpop.eup %715 }
  0xe2   :  { %v718_v11 = vpop.eup %717 }
  0xe3   :  { %v720_v14 = vpop.eup %719 }
  0xe4   :  { %v722_v15 = vpop.eup %721 }
  0xe8   :  { %665 = vmatmul.msk.f32.gmra.mxu3 %vm43_vm0, %v714_v6 }
  0xf0   :  { %666 = vmatmul.msk.f32.gmra.mxu3 %vm43_vm0, %v716_v8 }
  0xf8   :  { %667 = vmatmul.msk.f32.gmra.mxu3 %vm43_vm0, %v718_v11 }
 0x100   :  { %668 = vmatmul.msk.f32.gmra.mxu3 %vm43_vm0, %v720_v14 }
 0x108   :  { %669 = vmatmul.msk.f32.gmra.mxu3 %vm43_vm0, %v722_v15 }
 0x10d   :  { %v254_v16 = vpop.f32.mrf.mxu1 }
 0x10e   :  { %v302_v29 = vsel %vm43_vm0, %v254_v16, -inf }
 0x115   :  { %v257_v17 = vpop.f32.mrf.mxu1 }
 0x116   :  { %v303_v24 = vsel %vm43_vm0, %v257_v17, -inf }
 0x11d   :  { %v260_v18 = vpop.f32.mrf.mxu1 }
 0x11e   :  { %v304_v30 = vsel %vm43_vm0, %v260_v18, -inf }
 0x125   :  { %v263_v19 = vpop.f32.mrf.mxu1 }
 0x126   :  { %v305_v31 = vsel %vm43_vm0, %v263_v19, -inf }
 0x12d   :  { %v266_v20 = vpop.f32.mrf.mxu1 }
 0x12e   :  { %v306_v25 = vsel %vm43_vm0, %v266_v20, -inf }
 0x12f   :  { %v307_v33 = vmax.f32 %v302_v29, %v306_v25 }
 0x135   :  { %v269_v21 = vpop.f32.mrf.mxu1 }
 0x136   :  { %v308_v23 = vsel %vm43_vm0, %v269_v21, -inf }
 0x137   :  { %v309_v27 = vmax.f32 %v303_v24, %v308_v23 }
 0x139   :  { %v314_v36 = vmax.f32 %v307_v33, %v309_v27 }
 0x13d   :  { %v272_v22 = vpop.f32.mrf.mxu1 }
 0x13e   :  { %v310_v26 = vsel %vm43_vm0, %v272_v22, -inf }
 0x13f   :  { %v311_v34 = vmax.f32 %v304_v30, %v310_v26 }
 0x145   :  { %v275_v28 = vpop.f32.mrf.mxu1 }
 0x146   :  { %v312_v32 = vsel %vm43_vm0, %v275_v28, -inf }
 0x147   :  { %v313_v35 = vmax.f32 %v305_v31, %v312_v32 }
 0x149   :  { %v315_v37 = vmax.f32 %v311_v34, %v313_v35 }
 0x14b   :  { %v316_v38 = vmax.f32 %v314_v36, %v315_v37 }
 0x14d   :  { %v317_v39 = vrot.slane %v316_v38, 4 }
 0x14f   :  { %v318_v40 = vmax.f32 %v316_v38, %v317_v39 }
 0x151   :  { %v319_v41 = vrot.slane %v318_v40, 2 }
 0x153   :  { %v320_v42 = vmax.f32 %v318_v40, %v319_v41 }
 0x155   :  { %v321_v43 = vrot.slane %v320_v42, 1 }
 0x157   :  { %v322_v44 = vmax.f32 %v320_v42, %v321_v43 }
 0x159   :  { %v323_v45 = vsub.f32 %v254_v16, %v322_v44  ;;  %v324_v46 = vsub.f32 %v257_v17, %v322_v44  ;;  %v325_v47 = vsub.f32 %v260_v18, %v322_v44  ;;  %v326_v48 = vsub.f32 %v263_v19, %v322_v44 }
 0x15a   :  { %v327_v49 = vsub.f32 %v266_v20, %v322_v44  ;;  %v328_v53 = vsub.f32 %v269_v21, %v322_v44  ;;  %v329_v55 = vsub.f32 %v272_v22, %v322_v44  ;;  %v330_v57 = vsub.f32 %v275_v28, %v322_v44  ;;  %v278_v28 = vpop.f32.mrf.mxu1 }
 0x15b   :  { %v331_v50 = vmul.f32 1.442695, %v323_v45  ;;  %v333_v51 = vmul.f32 1.442695, %v324_v46  ;;  %v335_v52 = vmul.f32 1.442695, %v325_v47 }
 0x15c   :  { %v337_v54 = vmul.f32 1.442695, %v326_v48  ;;  %v339_v56 = vmul.f32 1.442695, %v327_v49  ;;  %v341_v58 = vmul.f32 1.442695, %v328_v53 }
 0x15d   :  { %723 = vpow2.f32 %v331_v50  ;;  %v343_v60 = vmul.f32 1.442695, %v329_v55  ;;  %v345_v63 = vmul.f32 1.442695, %v330_v57  ;;  %v468_v36 = vsel %vm43_vm0, %v278_v28, -inf }
 0x15e   :  { %725 = vpow2.f32 %v333_v51 }
 0x15f   :  { %727 = vpow2.f32 %v335_v52 }
 0x160   :  { %729 = vpow2.f32 %v337_v54 }
 0x161   :  { %731 = vpow2.f32 %v339_v56 }
 0x162   :  { %733 = vpow2.f32 %v341_v58  ;;  %v281_v33 = vpop.f32.mrf.mxu1 }
 0x163   :  { %v910_v59 = vpop.f32.mrf.mxu3  ;;  %v912_v61 = vpop.eup %723  ;;  %735 = vpow2.f32 %v343_v60  ;;  %v469_v37 = vsel %vm43_vm0, %v281_v33, -inf }
 0x164   :  { %v914_v62 = vpop.eup %725  ;;  %v347_v0 = vsel %vm43_vm0, %v912_v61, 0.0  ;;  %737 = vpow2.f32 %v345_v63  ;;  %v470_v41 = vsel %vm43_vm0, %v910_v59, -inf }
 0x165   :  { %v918_v1 = vpop.eup %727  ;;  %v348_v2 = vsel %vm43_vm0, %v914_v62, 0.0 }
 0x166   :  { %v922_v3 = vpop.eup %729  ;;  %v349_v4 = vadd.f32 %v348_v2, %v347_v0  ;;  %v350_v5 = vsel %vm43_vm0, %v918_v1, 0.0 }
 0x167   :  { %v926_v6 = vpop.eup %731  ;;  %v352_v8 = vsel %vm43_vm0, %v922_v3, 0.0 }
 0x168   :  { %v351_v7 = vadd.f32 %v350_v5, %v349_v4  ;;  %v734_v9 = vpop.eup %733  ;;  %v354_v12 = vsel %vm43_vm0, %v926_v6, 0.0 }
 0x169   :  { %v736_v13 = vpop.eup %735  ;;  %v356_v15 = vsel %vm43_vm0, %v734_v9, 0.0 }
 0x16a   :  { %v353_v11 = vadd.f32 %v352_v8, %v351_v7  ;;  %v738_v16 = vpop.eup %737  ;;  %v358_v18 = vsel %vm43_vm0, %v736_v13, 0.0 }
 0x16b   :  { %v930_v10 = vpop.f32.mrf.mxu3  ;;  %v360_v20 = vsel %vm43_vm0, %v738_v16, 0.0 }
 0x16c   :  { %v355_v14 = vadd.f32 %v354_v12, %v353_v11  ;;  %v471_v42 = vsel %vm43_vm0, %v930_v10, -inf }
 0x16e   :  { %v357_v17 = vadd.f32 %v356_v15, %v355_v14 }
 0x170   :  { %v359_v19 = vadd.f32 %v358_v18, %v357_v17 }
 0x172   :  { %v361_v22 = vadd.f32 %v360_v20, %v359_v19 }
 0x173   :  { %v937_v21 = vpop.f32.mrf.mxu3 }
 0x174   :  { %v362_v23 = vrot.slane %v361_v22, 4  ;;  %v472_v38 = vsel %vm43_vm0, %v937_v21, -inf }
 0x175   :  { %v473_v49 = vmax.f32 %v468_v36, %v472_v38 }
 0x176   :  { %v363_v24 = vadd.f32 %v362_v23, %v361_v22 }
 0x178   :  { %v364_v25 = vrot.slane %v363_v24, 2 }
 0x17a   :  { %v365_v27 = vadd.f32 %v364_v25, %v363_v24 }
 0x17b   :  { %v939_v26 = vpop.f32.mrf.mxu3 }
 0x17c   :  { %v366_v29 = vrot.slane %v365_v27, 1  ;;  %v474_v34 = vsel %vm43_vm0, %v939_v26, -inf }
 0x17d   :  { %v475_v43 = vmax.f32 %v469_v37, %v474_v34 }
 0x17e   :  { %v367_v30 = vadd.f32 %v366_v29, %v365_v27 }
 0x17f   :  { %v480_v53 = vmax.f32 %v473_v49, %v475_v43 }
 0x180   :  { %739 = vrcp.f32 %v367_v30  ;;  %v379_v45 = vand.u32 2147483648, %v367_v30  ;;  %v377_v48 = vand.u32 2147483647, %v367_v30  ;;  %vm373_vm2 = vweird.f32 %v367_v30 }
 0x182   :  { %v380_v55 = vor.u32 1.1754944e-38, %v379_v45  ;;  %vm378_vm4 = vcmp.eq.f32.partialorder %v377_v48, 8.507059e+37 }
 0x183   :  { %v941_v31 = vpop.f32.mrf.mxu3 }
 0x184   :  { %v476_v39 = vsel %vm43_vm0, %v941_v31, -inf }
 0x185   :  { %v477_v50 = vmax.f32 %v470_v41, %v476_v39 }
 0x186   :  { %v740_v32 = vpop.eup %739 }
 0x187   :  { %v369_v35 = vmul.f32 %v740_v32, %v367_v30  ;;  %vm374_vm1 = vweird.f32 %v740_v32 }
 0x188   :  { %vm375_vm3 = vmor %vm373_vm2, %vm374_vm1 }
 0x189   :  { %v370_v40 = vsub.f32 1.0, %v369_v35 }
 0x18b   :  { %v299_v44 = vpop.f32.mrf.mxu3  ;;  %v371_v47 = vmul.f32 %v740_v32, %v370_v40 }
 0x18c   :  { %v478_v46 = vsel %vm43_vm0, %v299_v44, -inf }
 0x18d   :  { %v479_v51 = vmax.f32 %v471_v42, %v478_v46  ;;  %v372_v52 = vadd.f32 %v740_v32, %v371_v47 }
 0x18f   :  { %v481_v54 = vmax.f32 %v477_v50, %v479_v51  ;;  %v376_v56 = vsel %vm375_vm3, %v740_v32, %v372_v52 }
 0x190   :  { %v381_v58 = vsel %vm378_vm4, %v380_v55, %v376_v56 }
 0x191   :  { %v482_v57 = vmax.f32 %v480_v53, %v481_v54  ;;  %v382_v60 = vmul.f32 %v912_v61, %v381_v58  ;;  %v384_v63 = vmul.f32 %v918_v1, %v381_v58  ;;  %v385_v0 = vmul.f32 %v922_v3, %v381_v58 }
 0x192   :  { %v386_v4 = vmul.f32 %v926_v6, %v381_v58  ;;  %v387_v5 = vmul.f32 %v734_v9, %v381_v58  ;;  %v960_v7 = vmul.f32 %v736_v13, %v381_v58  ;;  %v962_v8 = vmul.f32 %v738_v16, %v381_v58 }
 0x193   :  { %v483_v2 = vrot.slane %v482_v57, 4  ;;  %390 = vxpose.xlu0.b32.start [1/8] (short) (narrow) %v382_v60, 32  ;;  %v383_v15 = vmul.f32 %v914_v62, %v381_v58 }
 0x195   :  { %v484_v11 = vmax.f32 %v482_v57, %v483_v2 }
 0x197   :  { %v485_v12 = vrot.slane %v484_v11, 2 }
 0x199   :  { %v486_v14 = vmax.f32 %v484_v11, %v485_v12 }
 0x19b   :  { %v487_v17 = vrot.slane %v486_v14, 1  ;;  %391 = vxpose.xlu0.b32.cont [2/8] (short) (narrow) %v383_v15, 32 }
 0x19d   :  { %v488_v61 = vmax.f32 %v486_v14, %v487_v17 }
 0x19f   :  { %v489_v1 = vsub.f32 %v278_v28, %v488_v61  ;;  %v490_v18 = vsub.f32 %v281_v33, %v488_v61  ;;  %v491_v3 = vsub.f32 %v910_v59, %v488_v61  ;;  %v492_v6 = vsub.f32 %v930_v10, %v488_v61 }
 0x1a0   :  { %v493_v9 = vsub.f32 %v937_v21, %v488_v61  ;;  %v494_v20 = vsub.f32 %v939_v26, %v488_v61  ;;  %v495_v62 = vsub.f32 %v941_v31, %v488_v61  ;;  %v496_v24 = vsub.f32 %v299_v44, %v488_v61 }
 0x1a1   :  { %v497_v13 = vmul.f32 1.442695, %v489_v1  ;;  %v499_v19 = vmul.f32 1.442695, %v490_v18  ;;  %v501_v16 = vmul.f32 1.442695, %v491_v3 }
 0x1a2   :  { %v503_v22 = vmul.f32 1.442695, %v492_v6  ;;  %v505_v23 = vmul.f32 1.442695, %v493_v9  ;;  %v507_v59 = vmul.f32 1.442695, %v494_v20 }
 0x1a3   :  { %392 = vxpose.xlu0.b32.cont [3/8] (short) (narrow) %v384_v63, 32  ;;  %741 = vpow2.f32 %v497_v13  ;;  %v509_v10 = vmul.f32 1.442695, %v495_v62  ;;  %v511_v27 = vmul.f32 1.442695, %v496_v24 }
 0x1a4   :  { %743 = vpow2.f32 %v499_v19 }
 0x1a5   :  { %745 = vpow2.f32 %v501_v16 }
 0x1a6   :  { %747 = vpow2.f32 %v503_v22 }
 0x1a7   :  { %749 = vpow2.f32 %v505_v23 }
 0x1a8   :  { %751 = vpow2.f32 %v507_v59 }
 0x1a9   :  { %v742_v25 = vpop.eup %741  ;;  %753 = vpow2.f32 %v509_v10 }
 0x1aa   :  { %v744_v21 = vpop.eup %743  ;;  %v513_v28 = vsel %vm43_vm0, %v742_v25, 0.0  ;;  %755 = vpow2.f32 %v511_v27 }
 0x1ab   :  { %v746_v26 = vpop.eup %745  ;;  %393 = vxpose.xlu0.b32.cont [4/8] (short) (narrow) %v385_v0, 32  ;;  %v514_v29 = vsel %vm43_vm0, %v744_v21, 0.0 }
 0x1ac   :  { %v748_v30 = vpop.eup %747  ;;  %v515_v31 = vadd.f32 %v514_v29, %v513_v28  ;;  %v516_v32 = vsel %vm43_vm0, %v746_v26, 0.0 }
 0x1ad   :  { %v750_v33 = vpop.eup %749  ;;  %v518_v35 = vsel %vm43_vm0, %v748_v30, 0.0 }
 0x1ae   :  { %v517_v34 = vadd.f32 %v516_v32, %v515_v31  ;;  %v752_v36 = vpop.eup %751  ;;  %v520_v38 = vsel %vm43_vm0, %v750_v33, 0.0 }
 0x1af   :  { %v754_v39 = vpop.eup %753  ;;  %v522_v41 = vsel %vm43_vm0, %v752_v36, 0.0 }
 0x1b0   :  { %v519_v37 = vadd.f32 %v518_v35, %v517_v34  ;;  %v756_v42 = vpop.eup %755  ;;  %v524_v44 = vsel %vm43_vm0, %v754_v39, 0.0 }
 0x1b1   :  { %v526_v46 = vsel %vm43_vm0, %v756_v42, 0.0 }
 0x1b2   :  { %v521_v40 = vadd.f32 %v520_v38, %v519_v37 }
 0x1b3   :  { %394 = vxpose.xlu0.b32.cont [5/8] (short) (narrow) %v386_v4, 32 }
 0x1b4   :  { %v523_v43 = vadd.f32 %v522_v41, %v521_v40 }
 0x1b6   :  { %v525_v45 = vadd.f32 %v524_v44, %v523_v43 }
 0x1b8   :  { %v527_v47 = vadd.f32 %v526_v46, %v525_v45 }
 0x1ba   :  { %v528_v48 = vrot.slane %v527_v47, 4 }
 0x1bb   :  { %395 = vxpose.xlu0.b32.cont [6/8] (short) (narrow) %v387_v5, 32 }
 0x1bc   :  { %v529_v49 = vadd.f32 %v528_v48, %v527_v47 }
 0x1be   :  { %v530_v50 = vrot.slane %v529_v49, 2 }
 0x1c0   :  { %v531_v51 = vadd.f32 %v530_v50, %v529_v49 }
 0x1c2   :  { %v532_v52 = vrot.slane %v531_v51, 1 }
 0x1c3   :  { %396 = vxpose.xlu0.b32.cont [7/8] (short) (narrow) %v960_v7, 32 }
 0x1c4   :  { %v533_v53 = vadd.f32 %v532_v52, %v531_v51 }
 0x1c6   :  { %757 = vrcp.f32 %v533_v53  ;;  %v545_v57 = vand.u32 2147483648, %v533_v53  ;;  %v543_v60 = vand.u32 2147483647, %v533_v53  ;;  %vm539_vm6 = vweird.f32 %v533_v53 }
 0x1c8   :  { %v546_v0 = vor.u32 1.1754944e-38, %v545_v57  ;;  %vm544_vm8 = vcmp.eq.f32.partialorder %v543_v60, 8.507059e+37 }
 0x1cb   :  { %397 = vxpose.xlu0.b32.end [8/8] (short) (narrow) %v962_v8, 32 }
 0x1cc   :  { %v758_v54 = vpop.eup %757 }
 0x1cd   :  { %v535_v55 = vmul.f32 %v758_v54, %v533_v53  ;;  %vm540_vm5 = vweird.f32 %v758_v54 }
 0x1ce   :  { %vm541_vm7 = vmor %vm539_vm6, %vm540_vm5 }
 0x1cf   :  { %v536_v56 = vsub.f32 1.0, %v535_v55 }
 0x1d1   :  { %v537_v58 = vmul.f32 %v758_v54, %v536_v56 }
 0x1d3   :  { %v538_v63 = vadd.f32 %v758_v54, %v537_v58 }
 0x1d5   :  { %v542_v2 = vsel %vm541_vm7, %v758_v54, %v538_v63 }
 0x1d6   :  { %v547_v4 = vsel %vm544_vm8, %v546_v0, %v542_v2 }
 0x1d7   :  { %v548_v5 = vmul.f32 %v742_v25, %v547_v4  ;;  %v549_v7 = vmul.f32 %v744_v21, %v547_v4  ;;  %v550_v11 = vmul.f32 %v746_v26, %v547_v4  ;;  %v551_v8 = vmul.f32 %v748_v30, %v547_v4 }
 0x1d8   :  { %v552_v12 = vmul.f32 %v750_v33, %v547_v4  ;;  %v553_v14 = vmul.f32 %v752_v36, %v547_v4  ;;  %v554_v15 = vmul.f32 %v754_v39, %v547_v4  ;;  %v555_v17 = vmul.f32 %v756_v42, %v547_v4 }
 0x1d9   :  { %556 = vxpose.xlu1.b32.start [1/8] (short) (narrow) %v548_v5, 32 }
 0x1e1   :  { %557 = vxpose.xlu1.b32.cont [2/8] (short) (narrow) %v549_v7, 32 }
 0x1e9   :  { %558 = vxpose.xlu1.b32.cont [3/8] (short) (narrow) %v550_v11, 32 }
 0x1f1   :  { %559 = vxpose.xlu1.b32.cont [4/8] (short) (narrow) %v551_v8, 32 }
 0x1f9   :  { %560 = vxpose.xlu1.b32.cont [5/8] (short) (narrow) %v552_v12, 32 }
 0x201   :  { %561 = vxpose.xlu1.b32.cont [6/8] (short) (narrow) %v553_v14, 32 }
 0x209   :  { %562 = vxpose.xlu1.b32.cont [7/8] (short) (narrow) %v554_v15, 32 }
 0x211   :  { %563 = vxpose.xlu1.b32.end [8/8] (short) (narrow) %v555_v17, 32 }
 0x237   :  { %v406_v61 = vpop.trf.xlu0 }
 0x238   :  { %670 = vmatmul.msk.f32.vlgmr.msrb.gmra.mxu2 %vm422_vm9, %v406_v61 }
 0x23f   :  { %v407_v1 = vpop.trf.xlu0 }
 0x240   :  { %671 = vmatmul.msk.f32.gmra.mxu2 %vm422_vm9, %v407_v1 }
 0x247   :  { %v408_v18 = vpop.trf.xlu0 }
 0x248   :  { %672 = vmatmul.msk.f32.gmra.mxu2 %vm422_vm9, %v408_v18 }
 0x24f   :  { %v409_v3 = vpop.trf.xlu0 }
 0x250   :  { %673 = vmatmul.msk.f32.gmra.mxu2 %vm422_vm9, %v409_v3 }
 0x27d   :  { %v572_v6 = vpop.trf.xlu1 }
 0x27e   :  { %674 = vmatmul.msk.f32.vlgmr.msrb.gmra.mxu3 %vm422_vm9, %v572_v6 }
 0x285   :  { %v573_v9 = vpop.trf.xlu1 }
 0x286   :  { %675 = vmatmul.msk.f32.gmra.mxu3 %vm422_vm9, %v573_v9 }
 0x28d   :  { %v574_v13 = vpop.trf.xlu1 }
 0x28e   :  { %676 = vmatmul.msk.f32.gmra.mxu3 %vm422_vm9, %v574_v13 }
 0x295   :  { %v575_v19 = vpop.trf.xlu1 }
 0x296   :  { %677 = vmatmul.msk.f32.gmra.mxu3 %vm422_vm9, %v575_v19 }
 0x2bb   :  { %v452_v16 = vpop.f32.mrf.mxu2 }
 0x2bc   :  { %464 = vst.msk [vmem:[%s1014_s2] sm:$0xff] %vm43_vm0, %v452_v16 }
 0x2c3   :  { %v455_v20 = vpop.f32.mrf.mxu2 }
 0x2c4   :  { %465 = vst.msk [vmem:[%s1014_s2 + $0x8] sm:$0xff] %vm43_vm0, %v455_v20 }
 0x2cb   :  { %v458_v22 = vpop.f32.mrf.mxu2 }
 0x2cc   :  { %466 = vst.msk [vmem:[%s1014_s2 + $0x10] sm:$0xff] %vm43_vm0, %v458_v22 }
 0x2d3   :  { %v461_v62 = vpop.f32.mrf.mxu2 }
 0x2d4   :  { %467 = vst.msk [vmem:[%s1014_s2 + $0x18] sm:$0xff] %vm43_vm0, %v461_v62 }
 0x301   :  { %v617_v23 = vpop.f32.mrf.mxu3 }
 0x302   :  { %678 = vst.msk [vmem:[%s1014_s2 + $0x20] sm:$0xff] %vm43_vm0, %v617_v23 }
 0x309   :  { %v620_v24 = vpop.f32.mrf.mxu3 }
 0x30a   :  { %679 = vst.msk [vmem:[%s1014_s2 + $0x28] sm:$0xff] %vm43_vm0, %v620_v24 }
 0x311   :  { %v623_v59 = vpop.f32.mrf.mxu3 }
 0x312   :  { %680 = vst.msk [vmem:[%s1014_s2 + $0x30] sm:$0xff] %vm43_vm0, %v623_v59 }
 0x319   :  { %v626_v10 = vpop.f32.mrf.mxu3 }
 0x31a   :  { %681 = vst.msk [vmem:[%s1014_s2 + $0x38] sm:$0xff] %vm43_vm0, %v626_v10 }

</bundles_post_ra>
